<compile_context>
chip_gen: v7x
topology: tpu7x:2x2x1
jax: 0.10.0
libtpu: 0.0.40
codegen_flags: <defaults>
</compile_context>

<pallas_src>
import jax
import jax.numpy as jnp
from jax.experimental import pallas as pl
from jax.experimental.pallas import tpu as pltpu

COMPUTE_DTYPE = jnp.bfloat16  # MXU operand dtype; accumulation is always f32.


def _round_up(n, m):
    return ((n + m - 1) // m) * m


def mlp_kernel(x_ref, w1_ref, b1_ref, w2_ref, b2_ref, w3_ref, b3_ref,
               w4_ref, b4_ref, o_ref):
    # x tile: (TM, K) bf16. Weights bf16, biases f32. All matmuls accumulate in f32 on MXU;
    # bias-add / ReLU run in f32 on the VPU (v5e-safe), then re-cast to bf16 for the next dot.
    x = x_ref[...]
    h = jnp.dot(x, w1_ref[...], preferred_element_type=jnp.float32) + b1_ref[...]
    h = jnp.maximum(h, 0.0).astype(COMPUTE_DTYPE)
    h = jnp.dot(h, w2_ref[...], preferred_element_type=jnp.float32) + b2_ref[...]
    h = jnp.maximum(h, 0.0).astype(COMPUTE_DTYPE)
    h = jnp.dot(h, w3_ref[...], preferred_element_type=jnp.float32) + b3_ref[...]
    h = jnp.maximum(h, 0.0).astype(COMPUTE_DTYPE)
    y = jnp.dot(h, w4_ref[...], preferred_element_type=jnp.float32) + b4_ref[...]
    o_ref[...] = y.astype(o_ref.dtype)  # (TM, N) with N a multiple of 128 -> lane-dense store


def prepare_params(params, input_size, hidden_size, output_size):
    """One-time prep: zero-pad every feature dim up to a multiple of 128 (lane width)
    and cast matmul weights to bf16. Zero padding preserves the forward exactly."""
    K = _round_up(input_size, 128)
    H = _round_up(hidden_size, 128)
    N = _round_up(output_size, 128)

    def pad_w(w, rows, cols):
        out = jnp.zeros((rows, cols), COMPUTE_DTYPE)
        return out.at[:w.shape[0], :w.shape[1]].set(w.astype(COMPUTE_DTYPE))

    def pad_b(b, cols):
        b = b.reshape(1, -1).astype(jnp.float32)
        out = jnp.zeros((1, cols), jnp.float32)
        return out.at[:, :b.shape[1]].set(b)

    return dict(
        w1=pad_w(params["w1"], K, H), b1=pad_b(params["b1"], H),
        w2=pad_w(params["w2"], H, H), b2=pad_b(params["b2"], H),
        w3=pad_w(params["w3"], H, H), b3=pad_b(params["b3"], H),
        w4=pad_w(params["w4"], H, N), b4=pad_b(params["b4"], N),
        dims=(input_size, hidden_size, output_size, K, H, N),
    )


def neural_network1_forward(x, prep, *, tm=256):
    """x: (B, input_size) f32. prep: output of prepare_params. Returns (B, output_size) f32."""
    input_size, _, output_size, K, H, N = prep["dims"]
    B = x.shape[0]

    # Batch tile: multiple of 8 (sublane), no bigger than the (rounded-up) batch.
    tm = max(8, _round_up(min(tm, _round_up(B, 8)), 8))
    grid_b = pl.cdiv(B, tm)
    Bp = grid_b * tm

    # Pad batch + feature dims and cast to the MXU operand dtype.
    xp = jnp.zeros((Bp, K), COMPUTE_DTYPE)
    xp = xp.at[:B, :input_size].set(x.astype(COMPUTE_DTYPE))

    w1, b1 = prep["w1"], prep["b1"]
    w2, b2 = prep["w2"], prep["b2"]
    w3, b3 = prep["w3"], prep["b3"]
    w4, b4 = prep["w4"], prep["b4"]

    # VMEM budget: resident weights/biases + double-buffered x/out tiles, with 2x headroom.
    itemsize = jnp.dtype(COMPUTE_DTYPE).itemsize
    weight_bytes = sum(int(a.size) * a.dtype.itemsize
                       for a in (w1, b1, w2, b2, w3, b3, w4, b4))
    tile_bytes = 2 * (tm * K * itemsize) + 2 * (tm * N * 4)
    vmem_limit = int(min(max(2 * (weight_bytes + tile_bytes), 8 * 1024 * 1024),
                         48 * 1024 * 1024))

    out = pl.pallas_call(
        mlp_kernel,
        out_shape=jax.ShapeDtypeStruct((Bp, N), jnp.float32),
        grid=(grid_b,),
        in_specs=[
            pl.BlockSpec((tm, K), lambda i: (i, 0)),   # x: tiled over batch
            pl.BlockSpec((K, H), lambda i: (0, 0)),    # weights/biases: VMEM-resident
            pl.BlockSpec((1, H), lambda i: (0, 0)),
            pl.BlockSpec((H, H), lambda i: (0, 0)),
            pl.BlockSpec((1, H), lambda i: (0, 0)),
            pl.BlockSpec((H, H), lambda i: (0, 0)),
            pl.BlockSpec((1, H), lambda i: (0, 0)),
            pl.BlockSpec((H, N), lambda i: (0, 0)),
            pl.BlockSpec((1, N), lambda i: (0, 0)),
        ],
        out_specs=pl.BlockSpec((tm, N), lambda i: (i, 0)),
        compiler_params=pltpu.CompilerParams(
            dimension_semantics=("parallel",),   # shards batch axis across TCs on v7x
            vmem_limit_bytes=vmem_limit,
        ),
    )(xp, w1, b1, w2, b2, w3, b3, w4, b4)

    return out[:B, :output_size]


def init_params(key, input_size, hidden_size, output_size):
    """Deterministic init mimicking PyTorch Linear default (uniform +/- 1/sqrt(fan_in)).
    Weights stored pre-transposed as (in, out), f32."""
    ks = jax.random.split(key, 8)

    def linear(kw, kb, fan_in, fan_out):
        bound = 1.0 / jnp.sqrt(jnp.float32(fan_in))
        w = jax.random.uniform(kw, (fan_in, fan_out), jnp.float32, -bound, bound)
        b = jax.random.uniform(kb, (1, fan_out), jnp.float32, -bound, bound)
        return w, b

    w1, b1 = linear(ks[0], ks[1], input_size, hidden_size)
    w2, b2 = linear(ks[2], ks[3], hidden_size, hidden_size)
    w3, b3 = linear(ks[4], ks[5], hidden_size, hidden_size)
    w4, b4 = linear(ks[6], ks[7], hidden_size, output_size)
    return dict(w1=w1, b1=b1, w2=w2, b2=b2, w3=w3, b3=b3, w4=w4, b4=b4)


def reference_forward_bf16(x, p):
    """Pure-JAX reference with the same bf16-operand / f32-accumulate numerics."""
    def lin(h, w, b):
        return jnp.dot(h.astype(COMPUTE_DTYPE), w.astype(COMPUTE_DTYPE),
                       preferred_element_type=jnp.float32) + b.astype(jnp.float32)
    h = jnp.maximum(lin(x, p["w1"], p["b1"]), 0.0)
    h = jnp.maximum(lin(h, p["w2"], p["b2"]), 0.0)
    h = jnp.maximum(lin(h, p["w3"], p["b3"]), 0.0)
    return lin(h, p["w4"], p["b4"])


if __name__ == "__main__":
    key = jax.random.PRNGKey(0)
    k_x, k_p = jax.random.split(key)

    batch, input_size, hidden_size, output_size = 64, 16, 32, 4
    x = jax.random.normal(k_x, (batch, input_size), jnp.float32)
    params = init_params(k_p, input_size, hidden_size, output_size)
    prep = prepare_params(params, input_size, hidden_size, output_size)

    # tm=32 -> grid of 2 batch tiles, exercising the pipelined / resident-weight path.
    out = neural_network1_forward(x, prep, tm=32)
    out = jax.block_until_ready(out)

    ref = reference_forward_bf16(x, params)
    assert out.shape == (batch, output_size)
    assert jnp.allclose(out, ref, atol=1e-2, rtol=1e-2), float(jnp.max(jnp.abs(out - ref)))

    print("KERNEL_OK")
</pallas_src>

<mosaic_0001>
module attributes {stable_mosaic.version = 11 : i64} {
  func.func @mlp_kernel(%arg0: i32, %arg1: memref<32x128xbf16, #tpu.memory_space<vmem>>, %arg2: memref<128x128xbf16, #tpu.memory_space<vmem>>, %arg3: memref<1x128xf32, #tpu.memory_space<vmem>>, %arg4: memref<128x128xbf16, #tpu.memory_space<vmem>>, %arg5: memref<1x128xf32, #tpu.memory_space<vmem>>, %arg6: memref<128x128xbf16, #tpu.memory_space<vmem>>, %arg7: memref<1x128xf32, #tpu.memory_space<vmem>>, %arg8: memref<128x128xbf16, #tpu.memory_space<vmem>>, %arg9: memref<1x128xf32, #tpu.memory_space<vmem>>, %arg10: memref<32x128xf32, #tpu.memory_space<vmem>>) attributes {dimension_semantics = [#tpu.dimension_semantics<parallel>], iteration_bounds = array<i64: 2>, scalar_prefetch = 0 : i64, scratch_operands = 0 : i64, tpu.core_type = #tpu.core_type<tc>, window_params = [{transform_indices = @transform_0, window_bounds = array<i64: 32, 128>}, {pipeline_mode = #tpu.pipeline_mode<synchronous>, transform_indices = @transform_1, window_bounds = array<i64: 128, 128>}, {pipeline_mode = #tpu.pipeline_mode<synchronous>, transform_indices = @transform_2, window_bounds = array<i64: 1, 128>}, {pipeline_mode = #tpu.pipeline_mode<synchronous>, transform_indices = @transform_3, window_bounds = array<i64: 128, 128>}, {pipeline_mode = #tpu.pipeline_mode<synchronous>, transform_indices = @transform_4, window_bounds = array<i64: 1, 128>}, {pipeline_mode = #tpu.pipeline_mode<synchronous>, transform_indices = @transform_5, window_bounds = array<i64: 128, 128>}, {pipeline_mode = #tpu.pipeline_mode<synchronous>, transform_indices = @transform_6, window_bounds = array<i64: 1, 128>}, {pipeline_mode = #tpu.pipeline_mode<synchronous>, transform_indices = @transform_7, window_bounds = array<i64: 128, 128>}, {pipeline_mode = #tpu.pipeline_mode<synchronous>, transform_indices = @transform_8, window_bounds = array<i64: 1, 128>}, {transform_indices = @transform_9, window_bounds = array<i64: 32, 128>}]} {
    %c0 = arith.constant 0 : index
    %c0_0 = arith.constant 0 : index
    %0 = vector.load %arg1[%c0, %c0_0] : memref<32x128xbf16, #tpu.memory_space<vmem>>, vector<32x128xbf16>
    %c0_1 = arith.constant 0 : index
    %c0_2 = arith.constant 0 : index
    %1 = vector.load %arg2[%c0_1, %c0_2] : memref<128x128xbf16, #tpu.memory_space<vmem>>, vector<128x128xbf16>
    %cst = arith.constant dense<0.000000e+00> : vector<32x128xf32>
    %2 = tpu.matmul %0, %1, %cst {dimension_numbers = #tpu.dot_dimension_numbers<[1], [0], [0], [1], [0, 0, 1, 1], [], []>} : vector<32x128xbf16>, vector<128x128xbf16>, vector<32x128xf32> -> vector<32x128xf32>
    %c0_3 = arith.constant 0 : index
    %c0_4 = arith.constant 0 : index
    %3 = vector.load %arg3[%c0_3, %c0_4] : memref<1x128xf32, #tpu.memory_space<vmem>>, vector<1x128xf32>
    %4 = vector.broadcast %3 : vector<1x128xf32> to vector<32x128xf32>
    %5 = arith.addf %2, %4 : vector<32x128xf32>
    %cst_5 = arith.constant 0.000000e+00 : f32
    %6 = vector.broadcast %cst_5 : f32 to vector<32x128xf32>
    %7 = arith.maximumf %5, %6 : vector<32x128xf32>
    %8 = arith.truncf %7 : vector<32x128xf32> to vector<32x128xbf16>
    %c0_6 = arith.constant 0 : index
    %c0_7 = arith.constant 0 : index
    %9 = vector.load %arg4[%c0_6, %c0_7] : memref<128x128xbf16, #tpu.memory_space<vmem>>, vector<128x128xbf16>
    %cst_8 = arith.constant dense<0.000000e+00> : vector<32x128xf32>
    %10 = tpu.matmul %8, %9, %cst_8 {dimension_numbers = #tpu.dot_dimension_numbers<[1], [0], [0], [1], [0, 0, 1, 1], [], []>} : vector<32x128xbf16>, vector<128x128xbf16>, vector<32x128xf32> -> vector<32x128xf32>
    %c0_9 = arith.constant 0 : index
    %c0_10 = arith.constant 0 : index
    %11 = vector.load %arg5[%c0_9, %c0_10] : memref<1x128xf32, #tpu.memory_space<vmem>>, vector<1x128xf32>
    %12 = vector.broadcast %11 : vector<1x128xf32> to vector<32x128xf32>
    %13 = arith.addf %10, %12 : vector<32x128xf32>
    %cst_11 = arith.constant 0.000000e+00 : f32
    %14 = vector.broadcast %cst_11 : f32 to vector<32x128xf32>
    %15 = arith.maximumf %13, %14 : vector<32x128xf32>
    %16 = arith.truncf %15 : vector<32x128xf32> to vector<32x128xbf16>
    %c0_12 = arith.constant 0 : index
    %c0_13 = arith.constant 0 : index
    %17 = vector.load %arg6[%c0_12, %c0_13] : memref<128x128xbf16, #tpu.memory_space<vmem>>, vector<128x128xbf16>
    %cst_14 = arith.constant dense<0.000000e+00> : vector<32x128xf32>
    %18 = tpu.matmul %16, %17, %cst_14 {dimension_numbers = #tpu.dot_dimension_numbers<[1], [0], [0], [1], [0, 0, 1, 1], [], []>} : vector<32x128xbf16>, vector<128x128xbf16>, vector<32x128xf32> -> vector<32x128xf32>
    %c0_15 = arith.constant 0 : index
    %c0_16 = arith.constant 0 : index
    %19 = vector.load %arg7[%c0_15, %c0_16] : memref<1x128xf32, #tpu.memory_space<vmem>>, vector<1x128xf32>
    %20 = vector.broadcast %19 : vector<1x128xf32> to vector<32x128xf32>
    %21 = arith.addf %18, %20 : vector<32x128xf32>
    %cst_17 = arith.constant 0.000000e+00 : f32
    %22 = vector.broadcast %cst_17 : f32 to vector<32x128xf32>
    %23 = arith.maximumf %21, %22 : vector<32x128xf32>
    %24 = arith.truncf %23 : vector<32x128xf32> to vector<32x128xbf16>
    %c0_18 = arith.constant 0 : index
    %c0_19 = arith.constant 0 : index
    %25 = vector.load %arg8[%c0_18, %c0_19] : memref<128x128xbf16, #tpu.memory_space<vmem>>, vector<128x128xbf16>
    %cst_20 = arith.constant dense<0.000000e+00> : vector<32x128xf32>
    %26 = tpu.matmul %24, %25, %cst_20 {dimension_numbers = #tpu.dot_dimension_numbers<[1], [0], [0], [1], [0, 0, 1, 1], [], []>} : vector<32x128xbf16>, vector<128x128xbf16>, vector<32x128xf32> -> vector<32x128xf32>
    %c0_21 = arith.constant 0 : index
    %c0_22 = arith.constant 0 : index
    %27 = vector.load %arg9[%c0_21, %c0_22] : memref<1x128xf32, #tpu.memory_space<vmem>>, vector<1x128xf32>
    %28 = vector.broadcast %27 : vector<1x128xf32> to vector<32x128xf32>
    %29 = arith.addf %26, %28 : vector<32x128xf32>
    %c0_23 = arith.constant 0 : index
    %c0_24 = arith.constant 0 : index
    %30 = vector.load %arg10[%c0_23, %c0_24] : memref<32x128xf32, #tpu.memory_space<vmem>>, vector<32x128xf32>
    tpu.vector_store %arg10[%c0_23, %c0_24], %29 {strides = array<i32>} : memref<32x128xf32, #tpu.memory_space<vmem>>, vector<32x128xf32>,
    return
  }
  func.func @transform_0(%arg0: i32) -> (i32, i32) {
    %c0_i32 = arith.constant 0 : i32
    %c0_i32_0 = arith.constant 0 : i32
    return %arg0, %c0_i32 : i32, i32
  }
  func.func @transform_1(%arg0: i32) -> (i32, i32) {
    %c0_i32 = arith.constant 0 : i32
    %c0_i32_0 = arith.constant 0 : i32
    %c0_i32_1 = arith.constant 0 : i32
    return %c0_i32, %c0_i32_0 : i32, i32
  }
  func.func @transform_2(%arg0: i32) -> (i32, i32) {
    %c0_i32 = arith.constant 0 : i32
    %c0_i32_0 = arith.constant 0 : i32
    %c0_i32_1 = arith.constant 0 : i32
    return %c0_i32, %c0_i32_0 : i32, i32
  }
  func.func @transform_3(%arg0: i32) -> (i32, i32) {
    %c0_i32 = arith.constant 0 : i32
    %c0_i32_0 = arith.constant 0 : i32
    %c0_i32_1 = arith.constant 0 : i32
    return %c0_i32, %c0_i32_0 : i32, i32
  }
  func.func @transform_4(%arg0: i32) -> (i32, i32) {
    %c0_i32 = arith.constant 0 : i32
    %c0_i32_0 = arith.constant 0 : i32
    %c0_i32_1 = arith.constant 0 : i32
    return %c0_i32, %c0_i32_0 : i32, i32
  }
  func.func @transform_5(%arg0: i32) -> (i32, i32) {
    %c0_i32 = arith.constant 0 : i32
    %c0_i32_0 = arith.constant 0 : i32
    %c0_i32_1 = arith.constant 0 : i32
    return %c0_i32, %c0_i32_0 : i32, i32
  }
  func.func @transform_6(%arg0: i32) -> (i32, i32) {
    %c0_i32 = arith.constant 0 : i32
    %c0_i32_0 = arith.constant 0 : i32
    %c0_i32_1 = arith.constant 0 : i32
    return %c0_i32, %c0_i32_0 : i32, i32
  }
  func.func @transform_7(%arg0: i32) -> (i32, i32) {
    %c0_i32 = arith.constant 0 : i32
    %c0_i32_0 = arith.constant 0 : i32
    %c0_i32_1 = arith.constant 0 : i32
    return %c0_i32, %c0_i32_0 : i32, i32
  }
  func.func @transform_8(%arg0: i32) -> (i32, i32) {
    %c0_i32 = arith.constant 0 : i32
    %c0_i32_0 = arith.constant 0 : i32
    %c0_i32_1 = arith.constant 0 : i32
    return %c0_i32, %c0_i32_0 : i32, i32
  }
  func.func @transform_9(%arg0: i32) -> (i32, i32) {
    %c0_i32 = arith.constant 0 : i32
    %c0_i32_0 = arith.constant 0 : i32
    return %arg0, %c0_i32 : i32, i32
  }
}

</mosaic_0001>

<bundles_post_ra>
// kernel: tpu_custom_call.1
= control target key start
LH: loop header
LB: loop body
LE: loop exit
PB: predicated region body
PF: predicated region fallthrough
CT: control target
= control target key end

     0   :  { %s1949_s0 = inlined_call_operand.hbm [shape: bf16[64,128], index: 0, kind: input, shape index: {}]   ;;  %s1950_s1 = inlined_call_operand.hbm [shape: bf16[128,128], index: 1, kind: input, shape index: {}]   ;;  %s1951_s2 = inlined_call_operand.vmem [shape: f32[1,128], index: 2, kind: input, shape index: {}]   ;;  %s1952_s3 = inlined_call_operand.hbm [shape: bf16[128,128], index: 3, kind: input, shape index: {}]   ;;  %s1953_s4 = inlined_call_operand.vmem [shape: f32[1,128], index: 4, kind: input, shape index: {}]   ;;  %s1954_s5 = inlined_call_operand.hbm [shape: bf16[128,128], index: 5, kind: input, shape index: {}]   ;;  %s1955_s6 = inlined_call_operand.vmem [shape: f32[1,128], index: 6, kind: input, shape index: {}]   ;;  %s1956_s7 = inlined_call_operand.hbm [shape: bf16[128,128], index: 7, kind: input, shape index: {}]   ;;  %s1957_s8 = inlined_call_operand.vmem [shape: f32[1,128], index: 8, kind: input, shape index: {}]   ;;  %s1958_s9 = inlined_call_operand.hbm [shape: f32[64,128], index: 9, kind: output, shape index: {}]  }
   0x1   :  { %1965 = sst [smem:[#allocation18_spill]] %s1958_s9 }
   0x2   :  { %14 = vsyncpa [#allocation3], 0 }
   0x3   :  { %16 = vsyncpa [#allocation3 + $0x1], 0 }
   0x4   :  { %17 = vsyncpa [#allocation6], 0 }
   0x5   :  { %18 = vsyncpa [#allocation9], 0 }
   0x6   :  { %19 = vsyncpa [#allocation4], 0 }
   0x7   :  { %21 = vsyncpa [#allocation4 + $0x1], 0  ;;  %s1640_s30 = smov 0   ;;  %s1642_s10 = smov 0  }
   0x8   :  { %s1644_s11 = smov 0   ;;  %s1646_s12 = smov 0  }
   0x9 LB: > { %1966 = sst [smem:[#allocation16_spill]] %s1566_s30  ;;  %s1661_s13 = sadd.s32 4294967295, %s1578_s12   ;;  %s1578_s12 = sphi %s1646_s12, %s1990_s12   ;;  %s1574_s11 = sphi %s1644_s11, %s1989_s11   ;;  %s1570_s10 = sphi %s1642_s10, %s1988_s10   ;;  %s1566_s30 = sphi %s1640_s30, %s1987_s30  }
   0xa   : > { %s1055_s14 = sadd.s32 4294967294, %s1578_s12   ;;  %p47_p0 = scmp.ne.s32.totalorder %s1570_s10, %s1566_s30 }
   0xb   : > { %p1959_p1 = scmp.eq.s32.totalorder %s1661_s13, 0  ;;  %p245_p3 = scmp.eq.s32.totalorder %s1055_s14, 1 }
   0xc   : > { %p1056_p5 = scmp.ge.s32.totalorder %s1578_s12, 1  ;;  %p252_p7 = scmp.lt.s32.totalorder %s1578_s12, 3 }
   0xd   : > { %p1670_p4 = por %p1959_p1, %p47_p0  ;;  %p1675_p6 = por %p245_p3, %p47_p0 }
   0xe   : > { %p1680_p8 = pnand %p1056_p5, %p252_p7  ;;  %s1580_s18 = smov [#allocation5]  }
   0xf   : > { %s1967_s15 = scalar_select %p1670_p4, 1, 0 }
  0x10   : > { %s1968_s16 = scalar_select %p1675_p6, 1, 0 }
  0x11   : > { %s1970_s17 = scalar_select %p1680_p8, 1, 0 }
  0x12   : > { %1969 = sst [smem:[#allocation17_spill]] %s1968_s16  ;;  %s264_s19 = sshll.u32 %s1580_s18, 4  ;;  %s1684_s19 = int_to_ptr.vmem [resolvable:$true] %s264_s19 }
  0x13   : > { %p1257_p9 = pneg %p1680_p8  ;;  %s1581_s21 = smov [#allocation8]  }
  0x14   : > { %s296_s22 = sshll.u32 %s1581_s21, 4  ;;  %s1582_s23 = smov [#allocation7]   ;;  %s1695_s22 = int_to_ptr.vmem [resolvable:$true] %s296_s22 }
  0x15   : > { %p1691_p11 = pnand %p1257_p9, %p1959_p1  ;;  %s1697_s24 = sshll.u32 %s1582_s23, 4  ;;  %s281_s24 = int_to_ptr.vmem [resolvable:$true] %s1697_s24 }
  0x16   : > { %s1362_s27 = scalar_lea.hbm %s1950_s1, 1024 }
  0x17   : > { %p1363_p12 = scmp.ne.s32.totalorder %s1950_s1, %s1362_s27  ;;  %p1707_p13 = pneg %p1691_p11 }
  0x18   : > { %p1369_p5 = scmp.lt.u32.totalorder %s1362_s27, %s1950_s1 }
  0x19   : > { %p1365_p0 = pnand %p1707_p13, %p1363_p12 }
  0x1b   : > { %p1366_p3 = pneg %p1365_p0 }
  0x1d   : > { %p1371_p7 = pnand %p1369_p5, %p1366_p3 }
  0x1f   : > { %1374 = shalt.err (!%p1371_p7)
}
  0x20   : > { %s1375_s23 = scalar_lea.vmem %s1684_s19, 1024  ;;  %p1383_p2 = scmp.lt.s32.totalorder %s1684_s19, %s1684_s19 }
  0x21   : > { %p1376_p9 = scmp.ne.s32.totalorder %s1684_s19, %s1375_s23  ;;  %p1384_p6 = scmp.lt.s32.totalorder %s1375_s23, %s1375_s23 }
  0x23   : > { %p1378_p10 = pnand %p1376_p9, %p1707_p13  ;;  %p1385_p12 = por %p1384_p6, %p1383_p2 }
  0x25   : > { %p1379_p1 = pneg %p1378_p10 }
  0x27   : > { %p1386_p0 = pnand %p1385_p12, %p1379_p1 }
  0x29   : > { %1389 = shalt.err (!%p1386_p0)
}
  0x2a   : > { %s1583_s25 = smov 64   ;;  %s1584_s26 = smov 4  }
  0x2b   : > { %1260 = dma.hbm_to_vmem [thread:$0]  (!%p1691_p11), %s1950_s1, 1024, %s1684_s19, [#allocation6], %s1583_s25, %s1583_s25, %s1584_s26  }
  0x2c   : > { %s1390_s21 = scalar_lea.hbm %s1954_s5, 1024 }
  0x2d   : > { %p1391_p1 = scmp.ne.s32.totalorder %s1954_s5, %s1390_s21  ;;  %p1397_p10 = scmp.lt.u32.totalorder %s1390_s21, %s1954_s5 }
  0x2f   : > { %p1393_p2 = pnand %p1391_p1, %p1707_p13 }
  0x31   : > { %p1394_p6 = pneg %p1393_p2 }
  0x33   : > { %p1399_p3 = pnand %p1397_p10, %p1394_p6 }
  0x35   : > { %1402 = shalt.err (!%p1399_p3)
}
  0x36   : > { %s1403_s19 = scalar_lea.vmem %s1695_s22, 1024  ;;  %p1411_p12 = scmp.lt.s32.totalorder %s1695_s22, %s1695_s22 }
  0x37   : > { %p1404_p5 = scmp.ne.s32.totalorder %s1695_s22, %s1403_s19  ;;  %p1412_p0 = scmp.lt.s32.totalorder %s1403_s19, %s1403_s19 }
  0x39   : > { %p1406_p7 = pnand %p1404_p5, %p1707_p13  ;;  %p1413_p1 = por %p1412_p0, %p1411_p12 }
  0x3b   : > { %p1407_p9 = pneg %p1406_p7 }
  0x3d   : > { %p1414_p2 = pnand %p1413_p1, %p1407_p9 }
  0x3f   : > { %1417 = shalt.err (!%p1414_p2)
}
  0x40   : > { %1266 = dma.hbm_to_vmem [thread:$0]  (!%p1691_p11), %s1954_s5, 1024, %s1695_s22, [#allocation9], %s1583_s25, %s1583_s25, %s1584_s26  }
  0x41   : > { %s1418_s28 = scalar_lea.hbm %s1952_s3, 1024 }
  0x42   : > { %p1419_p6 = scmp.ne.s32.totalorder %s1952_s3, %s1418_s28  ;;  %p1425_p5 = scmp.lt.u32.totalorder %s1418_s28, %s1952_s3 }
  0x44   : > { %p1421_p10 = pnand %p1419_p6, %p1707_p13 }
  0x46   : > { %p1422_p3 = pneg %p1421_p10 }
  0x48   : > { %p1427_p7 = pnand %p1425_p5, %p1422_p3 }
  0x4a   : > { %1430 = shalt.err (!%p1427_p7)
}
  0x4b   : > { %s1431_s19 = scalar_lea.vmem %s281_s24, 1024  ;;  %p1439_p1 = scmp.lt.s32.totalorder %s281_s24, %s281_s24 }
  0x4c   : > { %p1432_p9 = scmp.ne.s32.totalorder %s281_s24, %s1431_s19  ;;  %p1440_p2 = scmp.lt.s32.totalorder %s1431_s19, %s1431_s19 }
  0x4e   : > { %p1434_p12 = pnand %p1432_p9, %p1707_p13  ;;  %p1441_p4 = por %p1440_p2, %p1439_p1 }
  0x50   : > { %p1435_p0 = pneg %p1434_p12 }
  0x52   : > { %p1442_p8 = pnand %p1441_p4, %p1435_p0 }
  0x54   : > { %1445 = shalt.err (!%p1442_p8)
}
  0x55   : > { %1263 = dma.hbm_to_vmem [thread:$0]  (!%p1691_p11), %s1952_s3, 1024, %s281_s24, [#allocation6], %s1583_s25, %s1583_s25, %s1584_s26  }
  0x56   : > { %s1585_s30 = smov [#allocation10]   ;;  %s1446_s29 = scalar_lea.hbm %s1956_s7, 1024 }
  0x57   : > { %s312_s16 = sshll.u32 %s1585_s30, 4  ;;  %p1447_p4 = scmp.ne.s32.totalorder %s1956_s7, %s1446_s29  ;;  %s313_s16 = int_to_ptr.vmem [resolvable:$true] %s312_s16 }
  0x58   : > { %p1453_p10 = scmp.lt.u32.totalorder %s1446_s29, %s1956_s7 }
  0x59   : > { %p1449_p8 = pnand %p1447_p4, %p1707_p13 }
  0x5b   : > { %p1450_p6 = pneg %p1449_p8 }
  0x5d   : > { %p1455_p3 = pnand %p1453_p10, %p1450_p6 }
  0x5f   : > { %1458 = shalt.err (!%p1455_p3)
}
  0x60   : > { %s1459_s24 = scalar_lea.vmem %s313_s16, 1024  ;;  %p1467_p12 = scmp.lt.s32.totalorder %s313_s16, %s313_s16 }
  0x61   : > { %p1460_p5 = scmp.ne.s32.totalorder %s313_s16, %s1459_s24  ;;  %p1468_p0 = scmp.lt.s32.totalorder %s1459_s24, %s1459_s24 }
  0x63   : > { %p1462_p7 = pnand %p1460_p5, %p1707_p13  ;;  %p1469_p1 = por %p1468_p0, %p1467_p12 }
  0x65   : > { %p1463_p9 = pneg %p1462_p7 }
  0x67   : > { %p1470_p2 = pnand %p1469_p1, %p1463_p9 }
  0x69   : > { %1473 = shalt.err (!%p1470_p2)
}
  0x6a   : > { %1269 = dma.hbm_to_vmem [thread:$0]  (!%p1691_p11), %s1956_s7, 1024, %s313_s16, [#allocation9], %s1583_s25, %s1583_s25, %s1584_s26  }
  0x6b   : > { %s1801_s14 = sadd.s32 1, %s1578_s12   ;;  %s34_s20 = sadd.s32 1, %s1574_s11 }
  0x6c   : > { %s31_s30 = ssub.s32 %s1578_s12, %s1801_s14  ;;  %p41_p13 = scmp.ne.s32.totalorder %s1574_s11, %s1570_s10 }
  0x6d   : > { %p32_p4 = scmp.eq.s32.totalorder %s31_s30, 0  ;;  %p42_p8 = scmp.eq.s32.totalorder %s1578_s12, 0 }
  0x6e   : > { %p1973_p6 = scmp.eq.s32.totalorder %s1661_s13, 1  ;;  %p1282_p3 = scmp.lt.s32.totalorder %s1578_s12, 2 }
  0x6f   : > { %s1817_s28 = scalar_select %p32_p4, %s1574_s11, %s34_s20  }
  0x70   : > { %p1811_p10 = por %p1973_p6, %p41_p13  ;;  %p43_p5 = por %p42_p8, %p41_p13 }
  0x71   : > { %s329_s29 = sand.u32 1, %s1574_s11   ;;  %s1115_s16 = sshll.u32 %s1578_s12, 8 }
  0x72   : > { %s1062_s18 = sshll.u32 %s329_s29, 4  ;;  %s1824_s19 = scalar_lea.hbm %s1949_s0, %s1115_s16 }
  0x73   : > { %s333_s24 = scalar_lea.vmem [#allocation2], %s1062_s18  ;;  %p1828_p11 = pnand %p1282_p3, %p43_p5 }
  0x74   : > { %s340_s22 = sshll.u32 %s333_s24, 4  ;;  %s1832_s20 = scalar_lea.sflag [#allocation3], %s329_s29  ;;  %s1826_s22 = int_to_ptr.vmem [resolvable:$true] %s340_s22 }
  0x75   : > { %s1474_s30 = scalar_lea.hbm %s1824_s19, 256  ;;  %p1476_p9 = pneg %p1828_p11 }
  0x76   : > { %p1475_p7 = scmp.ne.s32.totalorder %s1824_s19, %s1474_s30  ;;  %s1479_s21 = scalar_lea.hbm %s1949_s0, 512 }
  0x77   : > { %p1480_p1 = scmp.lt.u32.totalorder %s1824_s19, %s1949_s0  ;;  %p1481_p2 = scmp.lt.u32.totalorder %s1479_s21, %s1474_s30 }
  0x78   : > { %p1477_p12 = pnand %p1476_p9, %p1475_p7  ;;  %p1483_p4 = scmp.lt.u32.totalorder %s1474_s30, %s1824_s19 }
  0x79   : > { %p1482_p13 = por %p1481_p2, %p1480_p1 }
  0x7a   : > { %p1478_p0 = pneg %p1477_p12 }
  0x7b   : > { %p1484_p8 = por %p1483_p4, %p1482_p13 }
  0x7d   : > { %p1485_p6 = pnand %p1484_p8, %p1478_p0 }
  0x7f   : > { %1488 = shalt.err (!%p1485_p6)
}
  0x80   : > { %s1489_s29 = scalar_lea.vmem %s1826_s22, 256  ;;  %s1586_s18 = smov [#allocation2]  }
  0x81   : > { %p1490_p3 = scmp.ne.s32.totalorder %s1826_s22, %s1489_s29  ;;  %s1494_s16 = sshll.u32 %s1586_s18, 4  ;;  %s1495_s16 = int_to_ptr.vmem [resolvable:$false] %s1494_s16 }
  0x82   : > { %s1496_s23 = scalar_lea.vmem %s1495_s16, 512  ;;  %p1497_p12 = scmp.lt.s32.totalorder %s1826_s22, %s1495_s16 }
  0x83   : > { %p1492_p5 = pnand %p1490_p3, %p1476_p9  ;;  %p1498_p1 = scmp.lt.s32.totalorder %s1496_s23, %s1489_s29 }
  0x85   : > { %p1493_p7 = pneg %p1492_p5  ;;  %p1499_p2 = por %p1498_p1, %p1497_p12 }
  0x87   : > { %p1500_p13 = pnand %p1499_p2, %p1493_p7 }
  0x89   : > { %1503 = shalt.err (!%p1500_p13)
}
  0x8a   : > { %1273 = dma.hbm_to_vmem [thread:$0]  (!%p1828_p11), %s1824_s19, 256, %s1826_s22, %s1832_s20, %s1583_s25, %s1583_s25, %s1584_s26  }
  0x8b   : > { %p1976_p9 = scmp.ne.s32.totalorder %s1970_s17, 0 }
  0x8c   : > { %s1866_s30 = sand.u32 (!%p1976_p9), 1, %s1570_s10   ;;  %p1977_p0 = scmp.ne.s32.totalorder (!%p1976_p9), %s1967_s15, 0 }
  0x8d   : > { %352 = sbr.rel (%p1976_p9) target bundleno = 1087 (0x43f), region = 56  ;;  %s1066_s21 = sshll.u32 (!%p1976_p9), %s1866_s30, 4 }
  0x8e   : > { %s355_s24 = scalar_lea.sflag (!%p1976_p9), [#allocation3], %s1866_s30  ;;  %s1870_s29 = scalar_lea.vmem (!%p1976_p9), [#allocation2], %s1066_s21 }
  0x94   : > { %1549 = dma.done.wait (%p1977_p0), %s355_s24, 256  }
  0x95   : > { %1551 = vsyncadd (%p1977_p0), %s355_s24, 4294967040  ;;  %p1978_p11 = scmp.eq.s32.totalorder %s1661_s13, 0 }
  0x97   : > { %1553 = dma.done.wait (%p1978_p11), [#allocation6], 2048   ;;  %p1979_p4 = pmov %p1978_p11 }
  0x99   : > { %1555 = vsyncadd (%p1979_p4), [#allocation6], 4294965248  ;;  %p1980_p8 = pmov %p1979_p4 }
  0x9a   : > { %p1981_p6 = pmov %p1979_p4 }
  0x9b   : > { %1557 = dma.done.wait (%p1980_p8), [#allocation9], 2048  }
  0x9c   : > { %1559 = vsyncadd (%p1981_p6), [#allocation9], 4294965248  ;;  %v1328_v0 = vld [vmem:[#allocation5] sm:$0xff]   ;;  %v1329_v1 = vld [vmem:[#allocation5 + $0x8] sm:$0xff]   ;;  %s1071_s9 = sshll.u32 %s1866_s30, 5  ;;  %s1116_s21 = sshll.u32 %s1661_s13, 9 }
  0x9d   : > { %1157 = vmatprep.subr.bf16.mxu0 %v1328_v0  ;;  %v1330_v2 = vld [vmem:[#allocation5 + $0x10] sm:$0xff]   ;;  %v1331_v3 = vld [vmem:[#allocation5 + $0x18] sm:$0xff]   ;;  %v1338_v5 = vld [vmem:[#allocation7] sm:$0xff]   ;;  %s408_s16 = scalar_lea.vmem [#allocation11], %s1071_s9  ;;  %s1982_s15 = sld [smem:[#allocation18_spill]] }
  0x9e   : > { %1158 = vmatpush3.bf16.msra.mxu0 %v1328_v0  ;;  %v1336_v4 = vld [vmem:[%s1870_s29] sm:$0xff]   ;;  %v1339_v6 = vld [vmem:[#allocation7 + $0x8] sm:$0xff]   ;;  %1177 = vmatprep.subr.bf16.mxu1 %v1338_v5  ;;  %v1341_v10 = vld [vmem:[#allocation7 + $0x18] sm:$0xff]   ;;  %s944_s23 = sshll.u32 %s408_s16, 4  ;;  %s931_s13 = scalar_lea.sflag [#allocation4], %s1866_s30  ;;  %s1900_s23 = int_to_ptr.vmem [resolvable:$true] %s944_s23 }
  0x9f   : > { %1159 = vmatprep.subr.bf16.mxu0 %v1329_v1  ;;  %1173 = vmatprep.mubr.bf16.mxu0 %v1336_v4  ;;  %v1332_v7 = vld [vmem:[#allocation5 + $0x20] sm:$0xff]   ;;  %v1340_v8 = vld [vmem:[#allocation7 + $0x10] sm:$0xff]   ;;  %v1333_v9 = vld [vmem:[#allocation5 + $0x28] sm:$0xff]   ;;  %s1504_s25 = scalar_lea.vmem %s1900_s23, 512  ;;  %s1587_s26 = smov [#allocation11]  }
  0xa0   : > { %1178 = vmatpush3.bf16.msra.mxu1 %v1338_v5  ;;  %v1334_v11 = vld [vmem:[#allocation5 + $0x30] sm:$0xff]   ;;  %v1342_v12 = vld [vmem:[#allocation7 + $0x20] sm:$0xff]   ;;  %v1335_v13 = vld [vmem:[#allocation5 + $0x38] sm:$0xff]   ;;  %p1505_p3 = scmp.ne.s32.totalorder %s1900_s23, %s1504_s25  ;;  %s1508_s19 = sshll.u32 %s1587_s26, 4  ;;  %s1509_s19 = int_to_ptr.vmem [resolvable:$false] %s1508_s19 }
  0xa1   : > { %1179 = vmatprep.subr.bf16.mxu1 %v1339_v6  ;;  %v1343_v14 = vld [vmem:[#allocation7 + $0x28] sm:$0xff]   ;;  %v1344_v16 = vld [vmem:[#allocation7 + $0x30] sm:$0xff]   ;;  %v1345_v17 = vld [vmem:[#allocation7 + $0x38] sm:$0xff]   ;;  %s1510_s22 = scalar_lea.vmem %s1509_s19, 1024  ;;  %p1511_p12 = scmp.lt.s32.totalorder %s1900_s23, %s1509_s19 }
  0xa2   : > { %1160 = vmatpush3.bf16.msra.mxu0 %v1329_v1  ;;  %v1337_v15 = vld [vmem:[%s1870_s29 + $0x8] sm:$0xff]   ;;  %v1346_v18 = vld [vmem:[#allocation8] sm:$0xff]   ;;  %v1348_v20 = vld [vmem:[#allocation8 + $0x10] sm:$0xff]   ;;  %p1506_p5 = pnand %p1505_p3, %p1811_p10  ;;  %p1512_p1 = scmp.lt.s32.totalorder %s1510_s22, %s1504_s25 }
  0xa3   : > { %1161 = vmatprep.subr.bf16.mxu0 %v1330_v2  ;;  %v1347_v19 = vld [vmem:[#allocation8 + $0x8] sm:$0xff]   ;;  %v1349_v21 = vld [vmem:[#allocation8 + $0x18] sm:$0xff]   ;;  %v1350_v22 = vld [vmem:[#allocation8 + $0x20] sm:$0xff]   ;;  %s1905_s17 = scalar_lea.hbm %s1982_s15, %s1116_s21 }
  0xa4   : > { %1180 = vmatpush3.bf16.msra.mxu1 %v1339_v6  ;;  %v1351_v23 = vld [vmem:[#allocation8 + $0x28] sm:$0xff]   ;;  %v1072_v24 = vld [vmem:[%s1951_s2] ss:$0 sm:$0xff]  ;;  %v1352_v39 = vld [vmem:[#allocation8 + $0x30] sm:$0xff]   ;;  %p1507_p7 = pneg %p1506_p5  ;;  %p1513_p2 = por %p1512_p1, %p1511_p12 }
  0xa5   : > { %1181 = vmatprep.subr.bf16.mxu1 %v1340_v8  ;;  %v1353_v40 = vld [vmem:[#allocation8 + $0x38] sm:$0xff]   ;;  %v1354_v41 = vld [vmem:[#allocation10] sm:$0xff]   ;;  %v1355_v42 = vld [vmem:[#allocation10 + $0x8] sm:$0xff]  }
  0xa6   : > { %1162 = vmatpush3.bf16.msra.mxu0 %v1330_v2  ;;  %v1356_v43 = vld [vmem:[#allocation10 + $0x10] sm:$0xff]   ;;  %v1357_v44 = vld [vmem:[#allocation10 + $0x18] sm:$0xff]   ;;  %v1358_v45 = vld [vmem:[#allocation10 + $0x20] sm:$0xff]   ;;  %p1514_p13 = pnand %p1513_p2, %p1507_p7 }
  0xa7   : > { %1163 = vmatprep.subr.bf16.mxu0 %v1331_v3  ;;  %v1359_v46 = vld [vmem:[#allocation10 + $0x28] sm:$0xff]   ;;  %v1083_v47 = vld [vmem:[%s1953_s4] ss:$0 sm:$0xff]  ;;  %v1360_v62 = vld [vmem:[#allocation10 + $0x30] sm:$0xff]  }
  0xa8   : > { %1182 = vmatpush3.bf16.msra.mxu1 %v1340_v8  ;;  %v1361_v63 = vld [vmem:[#allocation10 + $0x38] sm:$0xff]   ;;  %v1092_v0 = vld [vmem:[%s1955_s6] ss:$0 sm:$0xff] }
  0xa9   : > { %1183 = vmatprep.subr.bf16.mxu1 %v1341_v10 }
  0xaa   : > { %1164 = vmatpush3.bf16.msra.mxu0 %v1331_v3 }
  0xab   : > { %1165 = vmatprep.subr.bf16.mxu0 %v1332_v7 }
  0xac   : > { %1184 = vmatpush3.bf16.msra.mxu1 %v1341_v10 }
  0xad   : > { %1185 = vmatprep.subr.bf16.mxu1 %v1342_v12 }
  0xae   : > { %1166 = vmatpush3.bf16.msra.mxu0 %v1332_v7 }
  0xaf   : > { %1167 = vmatprep.subr.bf16.mxu0 %v1333_v9 }
  0xb0   : > { %1186 = vmatpush3.bf16.msra.mxu1 %v1342_v12 }
  0xb1   : > { %1187 = vmatprep.subr.bf16.mxu1 %v1343_v14 }
  0xb2   : > { %1168 = vmatpush3.bf16.msra.mxu0 %v1333_v9 }
  0xb3   : > { %1169 = vmatprep.subr.bf16.mxu0 %v1334_v11 }
  0xb4   : > { %1188 = vmatpush3.bf16.msra.mxu1 %v1343_v14 }
  0xb5   : > { %1189 = vmatprep.subr.bf16.mxu1 %v1344_v16 }
  0xb6   : > { %1170 = vmatpush3.bf16.msra.mxu0 %v1334_v11 }
  0xb7   : > { %1171 = vmatprep.subr.bf16.mxu0 %v1335_v13 }
  0xb8   : > { %1190 = vmatpush3.bf16.msra.mxu1 %v1344_v16 }
  0xb9   : > { %1191 = vmatprep.subr.bf16.mxu1 %v1345_v17 }
  0xba   : > { %1172 = vmatpush3.bf16.msra.mxu0 %v1335_v13 }
  0xbb   : > { %1197 = vmatprep.subr.bf16.mxu0 %v1346_v18 }
  0xbc   : > { %1192 = vmatpush3.bf16.msra.mxu1 %v1345_v17 }
  0xbd   : > { %1174 = vmatmul.mubr.bf16.vlgmr.msra.gmra.mrb[0].mxu0 %v1337_v15  ;;  %1217 = vmatprep.subr.bf16.mxu1 %v1354_v41  ;;  %v1101_v15 = vld [vmem:[%s1957_s8] ss:$0 sm:$0xff] }
  0xbe   : > { %1198 = vmatpush3.bf16.msra.mxu0 %v1346_v18 }
  0xbf   : > { %1199 = vmatprep.subr.bf16.mxu0 %v1347_v19 }
  0xc2   : > { %1200 = vmatpush3.bf16.msra.mxu0 %v1347_v19 }
  0xc3   : > { %1201 = vmatprep.subr.bf16.mxu0 %v1348_v20 }
  0xc6   : > { %1202 = vmatpush3.bf16.msra.mxu0 %v1348_v20 }
  0xc7   : > { %1203 = vmatprep.subr.bf16.mxu0 %v1349_v21 }
  0xca   : > { %1204 = vmatpush3.bf16.msra.mxu0 %v1349_v21 }
  0xcb   : > { %1205 = vmatprep.subr.bf16.mxu0 %v1350_v22 }
  0xce   : > { %1206 = vmatpush3.bf16.msra.mxu0 %v1350_v22 }
  0xcf   : > { %1207 = vmatprep.subr.bf16.mxu0 %v1351_v23 }
  0xd2   : > { %1208 = vmatpush3.bf16.msra.mxu0 %v1351_v23 }
  0xd3   : > { %1209 = vmatprep.subr.bf16.mxu0 %v1352_v39 }
  0xd6   : > { %1210 = vmatpush3.bf16.msra.mxu0 %v1352_v39 }
  0xd7   : > { %1211 = vmatprep.subr.bf16.mxu0 %v1353_v40 }
  0xda   : > { %1212 = vmatpush3.bf16.msra.mxu0 %v1353_v40 }
 0x190   : > { %v1175_v25 = vpop.f32.mrb[0].mxu0 }
 0x191   : > { %v542_v26 = vadd.f32 %v1175_v25, %v1072_v24  ;;  %v533_v27 = vpop.f32.mrb[1].mxu0 }
 0x192   : > { %v534_v28 = vadd.f32 %v1072_v24, %v533_v27  ;;  %v1176_v29 = vpop.f32.mrb[2].mxu0 }
 0x193   : > { %v545_v30 = vadd.f32 %v1176_v29, %v1072_v24  ;;  %v536_v31 = vpop.f32.mrb[3].mxu0  ;;  %v550_v33 = vmax.f32 %v542_v26, 0.0 }
 0x194   : > { %v537_v32 = vadd.f32 %v1072_v24, %v536_v31  ;;  %v548_v35 = vmax.f32 %v534_v28, 0.0 }
 0x195   : > { %v551_v34 = vmax.f32 %v545_v30, 0.0 }
 0x196   : > { %v549_v36 = vmax.f32 %v537_v32, 0.0 }
 0x197   : > { %v553_v37 = vpack.c.bf16 %v551_v34, %v550_v33 }
 0x198   : > { %v552_v38 = vpack.c.bf16 %v549_v36, %v548_v35 }
 0x19a   : > { %1193 = vmatprep.mubr.bf16.mxu1 %v552_v38 }
 0x19b   : > { %1194 = vmatmul.mubr.bf16.vlgmr.msra.gmra.mrb[0].mxu1 %v553_v37 }
 0x19c   : > { %1218 = vmatpush3.bf16.msra.mxu1 %v1354_v41 }
 0x19d   : > { %1219 = vmatprep.subr.bf16.mxu1 %v1355_v42 }
 0x1a0   : > { %1220 = vmatpush3.bf16.msra.mxu1 %v1355_v42 }
 0x1a1   : > { %1221 = vmatprep.subr.bf16.mxu1 %v1356_v43 }
 0x1a4   : > { %1222 = vmatpush3.bf16.msra.mxu1 %v1356_v43 }
 0x1a5   : > { %1223 = vmatprep.subr.bf16.mxu1 %v1357_v44 }
 0x1a8   : > { %1224 = vmatpush3.bf16.msra.mxu1 %v1357_v44 }
 0x1a9   : > { %1225 = vmatprep.subr.bf16.mxu1 %v1358_v45 }
 0x1ac   : > { %1226 = vmatpush3.bf16.msra.mxu1 %v1358_v45 }
 0x1ad   : > { %1227 = vmatprep.subr.bf16.mxu1 %v1359_v46 }
 0x1b0   : > { %1228 = vmatpush3.bf16.msra.mxu1 %v1359_v46 }
 0x1b1   : > { %1229 = vmatprep.subr.bf16.mxu1 %v1360_v62 }
 0x1b4   : > { %1230 = vmatpush3.bf16.msra.mxu1 %v1360_v62 }
 0x1b5   : > { %1231 = vmatprep.subr.bf16.mxu1 %v1361_v63 }
 0x1b8   : > { %1232 = vmatpush3.bf16.msra.mxu1 %v1361_v63 }
 0x26e   : > { %v1195_v48 = vpop.f32.mrb[0].mxu1 }
 0x26f   : > { %v668_v49 = vadd.f32 %v1195_v48, %v1083_v47  ;;  %v659_v50 = vpop.f32.mrb[1].mxu1 }
 0x270   : > { %v660_v51 = vadd.f32 %v1083_v47, %v659_v50  ;;  %v1196_v52 = vpop.f32.mrb[2].mxu1 }
 0x271   : > { %v671_v53 = vadd.f32 %v1196_v52, %v1083_v47  ;;  %v662_v54 = vpop.f32.mrb[3].mxu1  ;;  %v676_v56 = vmax.f32 %v668_v49, 0.0 }
 0x272   : > { %v663_v55 = vadd.f32 %v1083_v47, %v662_v54  ;;  %v674_v58 = vmax.f32 %v660_v51, 0.0 }
 0x273   : > { %v677_v57 = vmax.f32 %v671_v53, 0.0 }
 0x274   : > { %v675_v59 = vmax.f32 %v663_v55, 0.0 }
 0x275   : > { %v679_v60 = vpack.c.bf16 %v677_v57, %v676_v56 }
 0x276   : > { %v678_v61 = vpack.c.bf16 %v675_v59, %v674_v58 }
 0x278   : > { %1213 = vmatprep.mubr.bf16.mxu0 %v678_v61 }
 0x279   : > { %1214 = vmatmul.mubr.bf16.vlgmr.msra.gmra.mrb[4].mxu0 %v679_v60 }
 0x34c   : > { %v1215_v1 = vpop.f32.mrb[4].mxu0 }
 0x34d   : > { %v794_v2 = vadd.f32 %v1215_v1, %v1092_v0  ;;  %v785_v3 = vpop.f32.mrb[5].mxu0 }
 0x34e   : > { %v786_v4 = vadd.f32 %v1092_v0, %v785_v3  ;;  %v1216_v5 = vpop.f32.mrb[6].mxu0 }
 0x34f   : > { %v797_v6 = vadd.f32 %v1216_v5, %v1092_v0  ;;  %v788_v7 = vpop.f32.mrb[7].mxu0  ;;  %v802_v9 = vmax.f32 %v794_v2, 0.0 }
 0x350   : > { %v789_v8 = vadd.f32 %v1092_v0, %v788_v7  ;;  %v800_v11 = vmax.f32 %v786_v4, 0.0 }
 0x351   : > { %v803_v10 = vmax.f32 %v797_v6, 0.0 }
 0x352   : > { %v801_v12 = vmax.f32 %v789_v8, 0.0 }
 0x353   : > { %v805_v13 = vpack.c.bf16 %v803_v10, %v802_v9 }
 0x354   : > { %v804_v14 = vpack.c.bf16 %v801_v12, %v800_v11 }
 0x356   : > { %1233 = vmatprep.mubr.bf16.mxu1 %v804_v14 }
 0x357   : > { %1234 = vmatmul.mubr.bf16.vlgmr.msra.gmra.mrb[4].mxu1 %v805_v13 }
 0x42a   : > { %v1235_v16 = vpop.f32.mrb[4].mxu1 }
 0x42b   : > { %v920_v17 = vadd.f32 %v1235_v16, %v1101_v15  ;;  %v911_v18 = vpop.f32.mrb[5].mxu1 }
 0x42c   : > { %v912_v19 = vadd.f32 %v1101_v15, %v911_v18  ;;  %v1236_v20 = vpop.f32.mrb[6].mxu1 }
 0x42d   : > { %928 = vst [vmem:[%s408_s16 + $0x10] sm:$0xff] %v920_v17  ;;  %v923_v21 = vadd.f32 %v1236_v20, %v1101_v15  ;;  %v914_v22 = vpop.f32.mrb[7].mxu1 }
 0x42e   : > { %926 = vst [vmem:[%s408_s16] sm:$0xff] %v912_v19  ;;  %v915_v23 = vadd.f32 %v1101_v15, %v914_v22 }
 0x42f   : > { %929 = vst [vmem:[%s408_s16 + $0x18] sm:$0xff] %v923_v21 }
 0x430   : > { %927 = vst [vmem:[%s408_s16 + $0x8] sm:$0xff] %v915_v23 }
 0x431   : > { %1517 = shalt.err (!%p1514_p13)
}
 0x432   : > { %s1518_s9 = scalar_lea.hbm %s1905_s17, 512  ;;  %s1522_s16 = scalar_lea.hbm %s1982_s15, 1024 }
 0x433   : > { %p1519_p9 = scmp.ne.s32.totalorder %s1905_s17, %s1518_s9  ;;  %p1523_p4 = scmp.lt.u32.totalorder %s1905_s17, %s1982_s15 }
 0x434   : > { %p1524_p8 = scmp.lt.u32.totalorder %s1522_s16, %s1518_s9  ;;  %p1526_p3 = scmp.lt.u32.totalorder %s1518_s9, %s1905_s17 }
 0x435   : > { %p1520_p0 = pnand %p1519_p9, %p1811_p10 }
 0x436   : > { %p1525_p6 = por %p1524_p8, %p1523_p4 }
 0x437   : > { %p1521_p11 = pneg %p1520_p0 }
 0x438   : > { %p1527_p5 = por %p1526_p3, %p1525_p6 }
 0x43a   : > { %p1528_p7 = pnand %p1527_p5, %p1521_p11 }
 0x43c   : > { %1531 = shalt.err (!%p1528_p7)
}
 0x43d   : > { %s1588_s29 = smov 128   ;;  %s1589_s25 = smov 8  }
 0x43e   : > { %1255 = dma.vmem_to_hbm [thread:$0]  (%p1811_p10), %s1900_s23, 512, %s1905_s17, %s931_s13, %s1588_s29, %s1588_s29, %s1589_s25  }
 0x43f PF: > { %s1983_s26 = sld [smem:[#allocation16_spill]]  ;;  %s1984_s19 = sld [smem:[#allocation17_spill]] }
 0x440   : > { %p1986_p1 = scmp.ge.s32.totalorder %s1578_s12, 2 }
 0x445   : > { %s959_s22 = sand.u32 1, %s1983_s26   ;;  %p1985_p12 = scmp.ne.s32.totalorder %s1984_s19, 0 }
 0x446   : > { %s960_s9 = scalar_lea.sflag [#allocation4], %s959_s22 }
 0x447   : > { %p1275_p2 = pnand %p1986_p1, %p1985_p12 }
 0x449   : > { %1561 = dma.done.wait (!%p1275_p2), %s960_s9, 512  }
 0x44a   : > { %1563 = vsyncadd (!%p1275_p2), %s960_s9, 4294966784  ;;  %p24_p13 = scmp.ge.s32.totalorder %s1801_s14, 4   ;;  %s1987_s30 = smov %s1570_s10 }
 0x44b   : > { %s1988_s10 = smov %s1574_s11  ;;  %s1989_s11 = smov %s1817_s28 }
 0x44c   : > { %s1990_s12 = smov %s1801_s14  ;;  %26 = sbr.rel (!%p24_p13) target bundleno = 9 (0x9), region = 117 }
 0x453   :  { %965 = vsyncpa [#allocation3], 1 }
 0x454   :  { %967 = vsyncpa [#allocation3 + $0x1], 1 }
 0x455   :  { %968 = vsyncpa [#allocation6], 1 }
 0x456   :  { %969 = vsyncpa [#allocation9], 1 }
 0x457   :  { %970 = vsyncpa [#allocation4], 1 }
 0x458   :  { %972 = vsyncpa [#allocation4 + $0x1], 1 }

</bundles_post_ra>
